<compile_context>
chip_gen: v7x
topology: tpu7x:2x2x1
jax: 0.10.0
libtpu: 0.0.40
codegen_flags: <defaults>
</compile_context>

<pallas_src>
import jax
import jax.numpy as jnp
from jax.experimental import pallas as pl
from jax.experimental.pallas import tpu as pltpu


# ---------------------------------------------------------------------------
# Kernel
# ---------------------------------------------------------------------------
def _mlp_softmax_kernel(x_ref,
                        w1_ref, b1_ref,
                        w2_ref, b2_ref,
                        w3_ref, b3_ref,
                        w4_ref, b4_ref,
                        o_ref):
    """Fused (Linear+ReLU) x3 -> Linear -> row softmax for one batch tile.

    x_ref is native f32 (cast to bf16 here for the MXU); weights are bf16,
    biases f32; all accumulation / elementwise math stays in f32 (v5e VPU/EUP
    have no bf16). The class dim is pre-padded to a full 128-lane vreg.
    """
    xb = x_ref[...].astype(jnp.bfloat16)                      # in-kernel pack (VPU)

    # layer1 + relu1
    h = jnp.dot(xb, w1_ref[...], preferred_element_type=jnp.float32) + b1_ref[...]
    h = jnp.maximum(h, 0.0)
    # layer2 + relu2
    h = jnp.dot(h.astype(jnp.bfloat16), w2_ref[...],
                preferred_element_type=jnp.float32) + b2_ref[...]
    h = jnp.maximum(h, 0.0)
    # layer3 + relu3
    h = jnp.dot(h.astype(jnp.bfloat16), w3_ref[...],
                preferred_element_type=jnp.float32) + b3_ref[...]
    h = jnp.maximum(h, 0.0)
    # layer4 (class dim padded to 128 lanes; fake classes have bias -1e9)
    logits = jnp.dot(h.astype(jnp.bfloat16), w4_ref[...],
                     preferred_element_type=jnp.float32) + b4_ref[...]

    # softmax over the (lane-dense) class axis
    m = jnp.max(logits, axis=-1, keepdims=True)
    e = jnp.exp(logits - m)                                    # fake classes -> 0
    denom = jnp.sum(e, axis=-1, keepdims=True)
    inv = pl.reciprocal(denom, approx=True)                    # EUP slot
    inv = inv * (2.0 - denom * inv)                            # Newton step -> ~f32 exact
    o_ref[...] = (e * inv).astype(o_ref.dtype)


# ---------------------------------------------------------------------------
# Wrapper helpers
# ---------------------------------------------------------------------------
def _round_up(n, m):
    return ((n + m - 1) // m) * m


def _num_tensorcores():
    """2 on v7x-style megacore chips, else 1. Defensive: never raises."""
    try:
        d = jax.devices()[0]
        kind = (getattr(d, "device_kind", "") or "").lower().replace(" ", "")
        if "v7" in kind or "tpu7" in kind:
            return 2
    except Exception:
        pass
    return 1


def _pick_tile_b(B, max_tile_b, num_cores):
    """One tile per batch up to max_tile_b on single-TC chips; split across
    cores on v7x only when the batch is big enough to amortize step overhead."""
    tile_b = min(max_tile_b, max(16, _round_up(B, 16)))
    if num_cores > 1 and B >= 256:
        per_core = max(16, _round_up(pl.cdiv(B, num_cores), 16))
        tile_b = min(tile_b, per_core)
    return tile_b


def prepare_params(params, *, lane_pad=128, fake_logit_bias=-1e9):
    """One-time param prep (hoisted out of the forward path):
       * weights -> bf16, biases -> f32
       * layer-4 padded to a lane-dense class dim (zeros in W, -1e9 bias).
    Returns (prepped_dict, num_classes)."""
    num_classes = params["w4"].shape[1]
    c_pad = _round_up(num_classes, lane_pad)

    prepped = {}
    for k in ("w1", "w2", "w3"):
        prepped[k] = params[k].astype(jnp.bfloat16)
    for k in ("b1", "b2", "b3"):
        prepped[k] = params[k].astype(jnp.float32)

    w4 = params["w4"].astype(jnp.bfloat16)
    b4 = params["b4"].astype(jnp.float32)
    if c_pad != num_classes:
        w4 = jnp.pad(w4, ((0, 0), (0, c_pad - num_classes)))
        b4 = jnp.pad(b4, ((0, 0), (0, c_pad - num_classes)),
                     constant_values=fake_logit_bias)
    prepped["w4"] = w4
    prepped["b4"] = b4
    return prepped, num_classes


def query_rerouter_forward(x, prepped, num_classes, *, max_tile_b=1024):
    """x: (B, input_size) float (any float dtype; cast to bf16 inside the kernel).
       prepped: output of prepare_params. Returns (B, num_classes) f32 softmax."""
    B, input_size = x.shape
    c_pad = prepped["w4"].shape[1]

    num_cores = _num_tensorcores()
    tile_b = _pick_tile_b(B, max_tile_b, num_cores)
    grid_b = pl.cdiv(B, tile_b)
    Bp = grid_b * tile_b            # padded output rows; tail rows are discarded

    # Weights/biases: constant block index -> resident in VMEM across grid steps.
    full = lambda shape: pl.BlockSpec(shape, lambda i: (0, 0))

    # VMEM budget: x double-buffer + (double-buffered) weights + output
    # double-buffer + f32/bf16 activation working set + headroom.
    x_tile_bytes = tile_b * input_size * x.dtype.itemsize
    weight_bytes = sum(int(v.size) * v.dtype.itemsize for v in prepped.values())
    out_tile_bytes = tile_b * c_pad * 4
    hidden_dims = (prepped["w1"].shape[1] + prepped["w2"].shape[1]
                   + prepped["w3"].shape[1] + c_pad)
    act_bytes = tile_b * hidden_dims * 6
    vmem_limit = int(2 * x_tile_bytes + 2 * weight_bytes + 2 * out_tile_bytes
                     + act_bytes + (4 << 20))
    vmem_limit = max(8 << 20, min(vmem_limit, 32 << 20))

    layer_dims = [prepped[k].shape for k in ("w1", "w2", "w3", "w4")]
    flops = 2 * Bp * sum(fi * fo for fi, fo in layer_dims)
    bytes_accessed = (int(x.size) * x.dtype.itemsize
                      + weight_bytes
                      + Bp * c_pad * 4)

    out = pl.pallas_call(
        _mlp_softmax_kernel,
        out_shape=jax.ShapeDtypeStruct((Bp, c_pad), jnp.float32),
        grid_spec=pltpu.PrefetchScalarGridSpec(
            num_scalar_prefetch=0,
            grid=(grid_b,),
            in_specs=[
                pl.BlockSpec((tile_b, input_size), lambda i: (i, 0)),   # x tile (f32)
                full(prepped["w1"].shape), full(prepped["b1"].shape),
                full(prepped["w2"].shape), full(prepped["b2"].shape),
                full(prepped["w3"].shape), full(prepped["b3"].shape),
                full(prepped["w4"].shape), full(prepped["b4"].shape),
            ],
            out_specs=pl.BlockSpec((tile_b, c_pad), lambda i: (i, 0)),
        ),
        compiler_params=pltpu.CompilerParams(
            dimension_semantics=("parallel",),
            vmem_limit_bytes=vmem_limit,
        ),
        cost_estimate=pl.CostEstimate(
            flops=flops,
            transcendentals=Bp * (c_pad + 1),
            bytes_accessed=bytes_accessed,
        ),
    )(x,
      prepped["w1"], prepped["b1"],
      prepped["w2"], prepped["b2"],
      prepped["w3"], prepped["b3"],
      prepped["w4"], prepped["b4"])

    # Drop padded tail rows (garbage, row-confined) and the fake padded classes.
    return out[:B, :num_classes]


# ---------------------------------------------------------------------------
# Params / references
# ---------------------------------------------------------------------------
def init_params(key, input_size=768, hidden_size=256, num_classes=4):
    """Deterministic init mimicking PyTorch nn.Linear default (uniform +/- 1/sqrt(fan_in))."""
    dims = [
        (input_size, hidden_size),
        (hidden_size, hidden_size // 2),
        (hidden_size // 2, hidden_size // 4),
        (hidden_size // 4, num_classes),
    ]
    params = {}
    for idx, (fan_in, fan_out) in enumerate(dims, start=1):
        key, kw, kb = jax.random.split(key, 3)
        bound = 1.0 / jnp.sqrt(fan_in)
        params[f"w{idx}"] = jax.random.uniform(
            kw, (fan_in, fan_out), jnp.float32, minval=-bound, maxval=bound)
        params[f"b{idx}"] = jax.random.uniform(
            kb, (1, fan_out), jnp.float32, minval=-bound, maxval=bound)
    return params


def reference_forward_f32(x, params):
    h = jnp.maximum(x @ params["w1"] + params["b1"], 0.0)
    h = jnp.maximum(h @ params["w2"] + params["b2"], 0.0)
    h = jnp.maximum(h @ params["w3"] + params["b3"], 0.0)
    logits = h @ params["w4"] + params["b4"]
    return jax.nn.softmax(logits, axis=1)


def reference_forward_bf16(x, params):
    """Matches the kernel's bf16-operand / f32-accumulate numerics."""
    bf16 = jnp.bfloat16
    h = jnp.dot(x.astype(bf16), params["w1"].astype(bf16),
                preferred_element_type=jnp.float32) + params["b1"]
    h = jnp.maximum(h, 0.0)
    h = jnp.dot(h.astype(bf16), params["w2"].astype(bf16),
                preferred_element_type=jnp.float32) + params["b2"]
    h = jnp.maximum(h, 0.0)
    h = jnp.dot(h.astype(bf16), params["w3"].astype(bf16),
                preferred_element_type=jnp.float32) + params["b3"]
    h = jnp.maximum(h, 0.0)
    logits = jnp.dot(h.astype(bf16), params["w4"].astype(bf16),
                     preferred_element_type=jnp.float32) + params["b4"]
    return jax.nn.softmax(logits, axis=1)


# TODO(synk): optional fp8 (v7x) / int8 (v6e) path for x/W1 behind a
# per-generation switch once accuracy is validated; bf16 everywhere for now.

if __name__ == "__main__":
    key = jax.random.PRNGKey(0)
    key, kx1, kx2 = jax.random.split(key, 3)

    input_size, hidden_size, num_classes = 768, 256, 4
    params = init_params(key, input_size, hidden_size, num_classes)
    prepped, n_cls = prepare_params(params)          # one-time cast + lane-dense pad

    # small serving-style batch (single tile)
    x1 = jax.random.normal(kx1, (8, input_size), jnp.float32)
    out1 = jax.block_until_ready(query_rerouter_forward(x1, prepped, n_cls))

    # ragged batch: exercises the cdiv grid / overhanging last input block path
    x2 = jax.random.normal(kx2, (20, input_size), jnp.float32)
    out2 = jax.block_until_ready(query_rerouter_forward(x2, prepped, n_cls))

    for x, out in ((x1, out1), (x2, out2)):
        assert out.shape == (x.shape[0], num_classes)
        assert jnp.allclose(jnp.sum(out, axis=1), 1.0, atol=1e-5), \
            "softmax rows must sum to 1"
        ref_bf16 = reference_forward_bf16(x, params)
        assert jnp.allclose(out, ref_bf16, atol=1e-4, rtol=1e-3), \
            "mismatch vs bf16-matched reference"
        ref_f32 = reference_forward_f32(x, params)
        assert jnp.allclose(out, ref_f32, atol=2e-2, rtol=2e-2), \
            "mismatch vs f32 reference"

    print("KERNEL_OK")
</pallas_src>

<mosaic_0001>
module attributes {stable_mosaic.version = 11 : i64} {
  func.func @_mlp_softmax_kernel(%arg0: i32, %arg1: memref<16x768xf32, #tpu.memory_space<vmem>>, %arg2: memref<768x256xbf16, #tpu.memory_space<vmem>>, %arg3: memref<1x256xf32, #tpu.memory_space<vmem>>, %arg4: memref<256x128xbf16, #tpu.memory_space<vmem>>, %arg5: memref<1x128xf32, #tpu.memory_space<vmem>>, %arg6: memref<128x64xbf16, #tpu.memory_space<vmem>>, %arg7: memref<1x64xf32, #tpu.memory_space<vmem>>, %arg8: memref<64x128xbf16, #tpu.memory_space<vmem>>, %arg9: memref<1x128xf32, #tpu.memory_space<vmem>>, %arg10: memref<16x128xf32, #tpu.memory_space<vmem>>) attributes {dimension_semantics = [#tpu.dimension_semantics<parallel>], iteration_bounds = array<i64: 1>, scalar_prefetch = 0 : i64, scratch_operands = 0 : i64, tpu.core_type = #tpu.core_type<tc>, window_params = [{transform_indices = @transform_0, window_bounds = array<i64: 16, 768>}, {pipeline_mode = #tpu.pipeline_mode<synchronous>, transform_indices = @transform_1, window_bounds = array<i64: 768, 256>}, {pipeline_mode = #tpu.pipeline_mode<synchronous>, transform_indices = @transform_2, window_bounds = array<i64: 1, 256>}, {pipeline_mode = #tpu.pipeline_mode<synchronous>, transform_indices = @transform_3, window_bounds = array<i64: 256, 128>}, {pipeline_mode = #tpu.pipeline_mode<synchronous>, transform_indices = @transform_4, window_bounds = array<i64: 1, 128>}, {pipeline_mode = #tpu.pipeline_mode<synchronous>, transform_indices = @transform_5, window_bounds = array<i64: 128, 64>}, {pipeline_mode = #tpu.pipeline_mode<synchronous>, transform_indices = @transform_6, window_bounds = array<i64: 1, 64>}, {pipeline_mode = #tpu.pipeline_mode<synchronous>, transform_indices = @transform_7, window_bounds = array<i64: 64, 128>}, {pipeline_mode = #tpu.pipeline_mode<synchronous>, transform_indices = @transform_8, window_bounds = array<i64: 1, 128>}, {transform_indices = @transform_9, window_bounds = array<i64: 16, 128>}]} {
    %c0 = arith.constant 0 : index
    %c0_0 = arith.constant 0 : index
    %0 = vector.load %arg1[%c0, %c0_0] : memref<16x768xf32, #tpu.memory_space<vmem>>, vector<16x768xf32>
    %1 = arith.truncf %0 : vector<16x768xf32> to vector<16x768xbf16>
    %c0_1 = arith.constant 0 : index
    %c0_2 = arith.constant 0 : index
    %2 = vector.load %arg2[%c0_1, %c0_2] : memref<768x256xbf16, #tpu.memory_space<vmem>>, vector<768x256xbf16>
    %cst = arith.constant dense<0.000000e+00> : vector<16x256xf32>
    %3 = tpu.matmul %1, %2, %cst {dimension_numbers = #tpu.dot_dimension_numbers<[1], [0], [0], [1], [0, 0, 1, 1], [], []>} : vector<16x768xbf16>, vector<768x256xbf16>, vector<16x256xf32> -> vector<16x256xf32>
    %c0_3 = arith.constant 0 : index
    %c0_4 = arith.constant 0 : index
    %4 = vector.load %arg3[%c0_3, %c0_4] : memref<1x256xf32, #tpu.memory_space<vmem>>, vector<1x256xf32>
    %5 = vector.broadcast %4 : vector<1x256xf32> to vector<16x256xf32>
    %6 = arith.addf %3, %5 : vector<16x256xf32>
    %cst_5 = arith.constant 0.000000e+00 : f32
    %7 = vector.broadcast %cst_5 : f32 to vector<16x256xf32>
    %8 = arith.maximumf %6, %7 : vector<16x256xf32>
    %9 = arith.truncf %8 : vector<16x256xf32> to vector<16x256xbf16>
    %c0_6 = arith.constant 0 : index
    %c0_7 = arith.constant 0 : index
    %10 = vector.load %arg4[%c0_6, %c0_7] : memref<256x128xbf16, #tpu.memory_space<vmem>>, vector<256x128xbf16>
    %cst_8 = arith.constant dense<0.000000e+00> : vector<16x128xf32>
    %11 = tpu.matmul %9, %10, %cst_8 {dimension_numbers = #tpu.dot_dimension_numbers<[1], [0], [0], [1], [0, 0, 1, 1], [], []>} : vector<16x256xbf16>, vector<256x128xbf16>, vector<16x128xf32> -> vector<16x128xf32>
    %c0_9 = arith.constant 0 : index
    %c0_10 = arith.constant 0 : index
    %12 = vector.load %arg5[%c0_9, %c0_10] : memref<1x128xf32, #tpu.memory_space<vmem>>, vector<1x128xf32>
    %13 = vector.broadcast %12 : vector<1x128xf32> to vector<16x128xf32>
    %14 = arith.addf %11, %13 : vector<16x128xf32>
    %cst_11 = arith.constant 0.000000e+00 : f32
    %15 = vector.broadcast %cst_11 : f32 to vector<16x128xf32>
    %16 = arith.maximumf %14, %15 : vector<16x128xf32>
    %17 = arith.truncf %16 : vector<16x128xf32> to vector<16x128xbf16>
    %c0_12 = arith.constant 0 : index
    %c0_13 = arith.constant 0 : index
    %18 = vector.load %arg6[%c0_12, %c0_13] : memref<128x64xbf16, #tpu.memory_space<vmem>>, vector<128x64xbf16>
    %cst_14 = arith.constant dense<0.000000e+00> : vector<16x64xf32>
    %19 = tpu.matmul %17, %18, %cst_14 {dimension_numbers = #tpu.dot_dimension_numbers<[1], [0], [0], [1], [0, 0, 1, 1], [], []>} : vector<16x128xbf16>, vector<128x64xbf16>, vector<16x64xf32> -> vector<16x64xf32>
    %c0_15 = arith.constant 0 : index
    %c0_16 = arith.constant 0 : index
    %20 = vector.load %arg7[%c0_15, %c0_16] : memref<1x64xf32, #tpu.memory_space<vmem>>, vector<1x64xf32>
    %21 = vector.broadcast %20 : vector<1x64xf32> to vector<16x64xf32>
    %22 = arith.addf %19, %21 : vector<16x64xf32>
    %cst_17 = arith.constant 0.000000e+00 : f32
    %23 = vector.broadcast %cst_17 : f32 to vector<16x64xf32>
    %24 = arith.maximumf %22, %23 : vector<16x64xf32>
    %25 = arith.truncf %24 : vector<16x64xf32> to vector<16x64xbf16>
    %c0_18 = arith.constant 0 : index
    %c0_19 = arith.constant 0 : index
    %26 = vector.load %arg8[%c0_18, %c0_19] : memref<64x128xbf16, #tpu.memory_space<vmem>>, vector<64x128xbf16>
    %cst_20 = arith.constant dense<0.000000e+00> : vector<16x128xf32>
    %27 = tpu.matmul %25, %26, %cst_20 {dimension_numbers = #tpu.dot_dimension_numbers<[1], [0], [0], [1], [0, 0, 1, 1], [], []>} : vector<16x64xbf16>, vector<64x128xbf16>, vector<16x128xf32> -> vector<16x128xf32>
    %c0_21 = arith.constant 0 : index
    %c0_22 = arith.constant 0 : index
    %28 = vector.load %arg9[%c0_21, %c0_22] : memref<1x128xf32, #tpu.memory_space<vmem>>, vector<1x128xf32>
    %29 = vector.broadcast %28 : vector<1x128xf32> to vector<16x128xf32>
    %30 = arith.addf %27, %29 : vector<16x128xf32>
    %cst_23 = arith.constant dense<0xFF800000> : vector<16xf32>
    %31 = vector.multi_reduction <maximumf>, %30, %cst_23 [1] : vector<16x128xf32> to vector<16xf32>
    %32 = vector.shape_cast %31 : vector<16xf32> to vector<16x1xf32>
    %33 = vector.broadcast %32 : vector<16x1xf32> to vector<16x128xf32>
    %34 = arith.subf %30, %33 : vector<16x128xf32>
    %35 = math.exp %34 : vector<16x128xf32>
    %cst_24 = arith.constant dense<0.000000e+00> : vector<16xf32>
    %36 = vector.multi_reduction <add>, %35, %cst_24 [1] : vector<16x128xf32> to vector<16xf32>
    %37 = vector.shape_cast %36 : vector<16xf32> to vector<16x1xf32>
    %38 = tpu.reciprocal %37 {approx = true} : vector<16x1xf32> -> vector<16x1xf32>
    %39 = arith.mulf %37, %38 : vector<16x1xf32>
    %cst_25 = arith.constant 2.000000e+00 : f32
    %40 = vector.broadcast %cst_25 : f32 to vector<16x1xf32>
    %41 = arith.subf %40, %39 : vector<16x1xf32>
    %42 = arith.mulf %38, %41 : vector<16x1xf32>
    %43 = vector.broadcast %42 : vector<16x1xf32> to vector<16x128xf32>
    %44 = arith.mulf %35, %43 : vector<16x128xf32>
    %c0_26 = arith.constant 0 : index
    %c0_27 = arith.constant 0 : index
    %45 = vector.load %arg10[%c0_26, %c0_27] : memref<16x128xf32, #tpu.memory_space<vmem>>, vector<16x128xf32>
    tpu.vector_store %arg10[%c0_26, %c0_27], %44 {strides = array<i32>} : memref<16x128xf32, #tpu.memory_space<vmem>>, vector<16x128xf32>,
    return
  }
  func.func @transform_0(%arg0: i32) -> (i32, i32) {
    %c0_i32 = arith.constant 0 : i32
    %c0_i32_0 = arith.constant 0 : i32
    return %arg0, %c0_i32 : i32, i32
  }
  func.func @transform_1(%arg0: i32) -> (i32, i32) {
    %c0_i32 = arith.constant 0 : i32
    %c0_i32_0 = arith.constant 0 : i32
    %c0_i32_1 = arith.constant 0 : i32
    return %c0_i32, %c0_i32_0 : i32, i32
  }
  func.func @transform_2(%arg0: i32) -> (i32, i32) {
    %c0_i32 = arith.constant 0 : i32
    %c0_i32_0 = arith.constant 0 : i32
    %c0_i32_1 = arith.constant 0 : i32
    return %c0_i32, %c0_i32_0 : i32, i32
  }
  func.func @transform_3(%arg0: i32) -> (i32, i32) {
    %c0_i32 = arith.constant 0 : i32
    %c0_i32_0 = arith.constant 0 : i32
    %c0_i32_1 = arith.constant 0 : i32
    return %c0_i32, %c0_i32_0 : i32, i32
  }
  func.func @transform_4(%arg0: i32) -> (i32, i32) {
    %c0_i32 = arith.constant 0 : i32
    %c0_i32_0 = arith.constant 0 : i32
    %c0_i32_1 = arith.constant 0 : i32
    return %c0_i32, %c0_i32_0 : i32, i32
  }
  func.func @transform_5(%arg0: i32) -> (i32, i32) {
    %c0_i32 = arith.constant 0 : i32
    %c0_i32_0 = arith.constant 0 : i32
    %c0_i32_1 = arith.constant 0 : i32
    return %c0_i32, %c0_i32_0 : i32, i32
  }
  func.func @transform_6(%arg0: i32) -> (i32, i32) {
    %c0_i32 = arith.constant 0 : i32
    %c0_i32_0 = arith.constant 0 : i32
    %c0_i32_1 = arith.constant 0 : i32
    return %c0_i32, %c0_i32_0 : i32, i32
  }
  func.func @transform_7(%arg0: i32) -> (i32, i32) {
    %c0_i32 = arith.constant 0 : i32
    %c0_i32_0 = arith.constant 0 : i32
    %c0_i32_1 = arith.constant 0 : i32
    return %c0_i32, %c0_i32_0 : i32, i32
  }
  func.func @transform_8(%arg0: i32) -> (i32, i32) {
    %c0_i32 = arith.constant 0 : i32
    %c0_i32_0 = arith.constant 0 : i32
    %c0_i32_1 = arith.constant 0 : i32
    return %c0_i32, %c0_i32_0 : i32, i32
  }
  func.func @transform_9(%arg0: i32) -> (i32, i32) {
    %c0_i32 = arith.constant 0 : i32
    %c0_i32_0 = arith.constant 0 : i32
    return %arg0, %c0_i32 : i32, i32
  }
}

</mosaic_0001>

<bundles_post_ra>
// kernel: tpu_custom_call.1
= control target key start
LH: loop header
LB: loop body
LE: loop exit
PB: predicated region body
PF: predicated region fallthrough
CT: control target
= control target key end

     0   :  { %14 = vsyncpa [#allocation3], 0  ;;  %s1895_s0 = inlined_call_operand.vmem [shape: f32[8,768], index: 0, kind: input, shape index: {}]   ;;  %s1896_s1 = inlined_call_operand.hbm [shape: bf16[768,256], index: 1, kind: input, shape index: {}]   ;;  %s1897_s2 = inlined_call_operand.vmem [shape: f32[1,256], index: 2, kind: input, shape index: {}]   ;;  %s1898_s3 = inlined_call_operand.hbm [shape: bf16[256,128], index: 3, kind: input, shape index: {}]   ;;  %s1899_s4 = inlined_call_operand.vmem [shape: f32[1,128], index: 4, kind: input, shape index: {}]   ;;  %s1900_s5 = inlined_call_operand.vmem [shape: bf16[128,64], index: 5, kind: input, shape index: {}]   ;;  %s1901_s6 = inlined_call_operand.vmem [shape: f32[1,64], index: 6, kind: input, shape index: {}]   ;;  %s1902_s7 = inlined_call_operand.vmem [shape: bf16[64,128], index: 7, kind: input, shape index: {}]   ;;  %s1903_s8 = inlined_call_operand.vmem [shape: f32[1,128], index: 8, kind: input, shape index: {}]   ;;  %s1904_s9 = inlined_call_operand.hbm [shape: f32[16,128], index: 9, kind: output, shape index: {}]  }
   0x1   :  { %15 = vsyncpa [#allocation6], 0 }
   0x2   :  { %16 = vsyncpa [#allocation4], 0  ;;  %s1694_s30 = smov [#allocation2]   ;;  %s1622_s13 = scalar_lea.hbm %s1896_s1, 12288 }
   0x3   :  { %s24_s10 = sshll.u32 %s1694_s30, 4  ;;  %p1623_p0 = scmp.ne.s32.totalorder %s1896_s1, %s1622_s13  ;;  %s25_s10 = int_to_ptr.vmem [resolvable:$true] %s24_s10 }
   0x4   :  { %p1626_p1 = scmp.lt.u32.totalorder %s1622_s13, %s1896_s1 }
   0x6   :  { %p1628_p2 = pnand %p1626_p1, %p1623_p0 }
   0x8   :  { %1631 = shalt.err (!%p1628_p2)
}
   0x9   :  { %s1632_s18 = scalar_lea.vmem %s25_s10, 12288  ;;  %p1637_p4 = scmp.lt.s32.totalorder %s25_s10, %s25_s10 }
   0xa   :  { %p1633_p3 = scmp.ne.s32.totalorder %s25_s10, %s1632_s18  ;;  %p1638_p5 = scmp.lt.s32.totalorder %s1632_s18, %s1632_s18 }
   0xc   :  { %p1639_p6 = por %p1638_p5, %p1637_p4 }
   0xe   :  { %p1640_p7 = pnand %p1639_p6, %p1633_p3 }
  0x10   :  { %1643 = shalt.err (!%p1640_p7)
}
  0x11   :  { %s1695_s19 = smov 128   ;;  %s1696_s20 = smov 8  }
  0x12   :  { %30 = dma.hbm_to_vmem [thread:$0]  %s1896_s1, 12288, %s25_s10, [#allocation3], %s1695_s19, %s1695_s19, %s1696_s20  }
  0x13   :  { %s1697_s23 = smov [#allocation5]   ;;  %s1644_s27 = scalar_lea.hbm %s1898_s3, 2048 }
  0x14   :  { %s38_s24 = sshll.u32 %s1697_s23, 4  ;;  %p1645_p8 = scmp.ne.s32.totalorder %s1898_s3, %s1644_s27  ;;  %s39_s24 = int_to_ptr.vmem [resolvable:$true] %s38_s24 }
  0x15   :  { %p1648_p9 = scmp.lt.u32.totalorder %s1644_s27, %s1898_s3 }
  0x17   :  { %p1650_p10 = pnand %p1648_p9, %p1645_p8 }
  0x19   :  { %1653 = shalt.err (!%p1650_p10)
}
  0x1a   :  { %s1654_s12 = scalar_lea.vmem %s39_s24, 2048  ;;  %p1659_p12 = scmp.lt.s32.totalorder %s39_s24, %s39_s24 }
  0x1b   :  { %p1655_p11 = scmp.ne.s32.totalorder %s39_s24, %s1654_s12  ;;  %p1660_p13 = scmp.lt.s32.totalorder %s1654_s12, %s1654_s12 }
  0x1d   :  { %p1661_p0 = por %p1660_p13, %p1659_p12 }
  0x1f   :  { %p1662_p1 = pnand %p1661_p0, %p1655_p11 }
  0x21   :  { %1665 = shalt.err (!%p1662_p1)
}
  0x22   :  { %s1698_s1 = smov 64   ;;  %s1699_s10 = smov 4  }
  0x23   :  { %44 = dma.hbm_to_vmem [thread:$0]  %s1898_s3, 2048, %s39_s24, [#allocation6], %s1698_s1, %s1698_s1, %s1699_s10  }
  0x24   :  { %1688 = dma.done.wait [#allocation3], 12288  }
  0x25   :  { %1689 = vsyncadd [#allocation3], 4294955008 }
  0x26   :  { %1690 = dma.done.wait [#allocation6], 2048  }
  0x27   :  { %1691 = vsyncadd [#allocation6], 4294965248  ;;  %v1442_v0 = vld [vmem:[#allocation2 + $0x104] ss:$8 sps:$4 sm:$0xff]   ;;  %v1444_v1 = vld [vmem:[#allocation2 + $0x100] ss:$8 sps:$4 sm:$0xff]  }
  0x28   :  { %711 = vmatprep.subr.bf16.mxu0 %v1442_v0  ;;  %v1445_v2 = vld [vmem:[#allocation2 + $0x114] ss:$8 sps:$4 sm:$0xff]   ;;  %v1447_v3 = vld [vmem:[#allocation2 + $0x110] ss:$8 sps:$4 sm:$0xff]   ;;  %v1448_v4 = vld [vmem:[#allocation2 + $0x124] ss:$8 sps:$4 sm:$0xff]  }
  0x29   :  { %712 = vmatpush1.bf16.msra.mxu0 %v1444_v1  ;;  %v1450_v5 = vld [vmem:[#allocation2 + $0x120] ss:$8 sps:$4 sm:$0xff]   ;;  %v1451_v6 = vld [vmem:[#allocation2 + $0x134] ss:$8 sps:$4 sm:$0xff]   ;;  %v1453_v7 = vld [vmem:[#allocation2 + $0x130] ss:$8 sps:$4 sm:$0xff]  }
  0x2a   :  { %713 = vmatprep.subr.bf16.mxu0 %v1445_v2  ;;  %v1454_v8 = vld [vmem:[#allocation2 + $0x144] ss:$8 sps:$4 sm:$0xff]   ;;  %v1456_v9 = vld [vmem:[#allocation2 + $0x140] ss:$8 sps:$4 sm:$0xff]   ;;  %v1457_v10 = vld [vmem:[#allocation2 + $0x154] ss:$8 sps:$4 sm:$0xff]  }
  0x2b   :  { %v1459_v11 = vld [vmem:[#allocation2 + $0x150] ss:$8 sps:$4 sm:$0xff]   ;;  %v1460_v12 = vld [vmem:[#allocation2 + $0x164] ss:$8 sps:$4 sm:$0xff]   ;;  %v1489_v14 = vld [vmem:[#allocation2] ss:$8 sps:$4 sm:$0xff]  }
  0x2c   :  { %v1487_v13 = vld [vmem:[#allocation2 + $0x4] ss:$8 sps:$4 sm:$0xff]   ;;  %v1462_v15 = vld [vmem:[#allocation2 + $0x160] ss:$8 sps:$4 sm:$0xff]   ;;  %v1463_v16 = vld [vmem:[#allocation2 + $0x174] ss:$8 sps:$4 sm:$0xff]  }
  0x2d   :  { %714 = vmatpush1.bf16.msra.mxu0 %v1447_v3  ;;  %668 = vmatprep.subr.bf16.mxu1 %v1487_v13  ;;  %v1493_v17 = vld [vmem:[#allocation2 + $0x14] ss:$8 sps:$4 sm:$0xff]   ;;  %v1495_v18 = vld [vmem:[#allocation2 + $0x10] ss:$8 sps:$4 sm:$0xff]   ;;  %v71_v20 = vld [vmem:[%s1895_s0 + $0x48] sm:$0xff]  ;;  %vm1701_vm0 = vmmov 0  }
  0x2e   :  { %715 = vmatprep.subr.bf16.mxu0 %v1448_v4  ;;  %669 = vmatpush1.bf16.msra.mxu1 %v1489_v14  ;;  %v65_v19 = vld [vmem:[%s1895_s0 + $0x18] sm:$0xff]  ;;  %v1499_v23 = vld [vmem:[#allocation2 + $0x24] ss:$8 sps:$4 sm:$0xff]   ;;  %v1501_v24 = vld [vmem:[#allocation2 + $0x20] ss:$8 sps:$4 sm:$0xff]   ;;  %vm1136_vm1 = vcmask 523264  }
  0x2f   :  { %670 = vmatprep.subr.bf16.mxu1 %v1493_v17  ;;  %v77_v21 = vpack.c.bf16 %v71_v20, %v65_v19  ;;  %v1465_v22 = vld [vmem:[#allocation2 + $0x170] ss:$8 sps:$4 sm:$0xff]   ;;  %v1466_v25 = vld [vmem:[#allocation2 + $0x184] ss:$8 sps:$4 sm:$0xff]   ;;  %v1468_v26 = vld [vmem:[#allocation2 + $0x180] ss:$8 sps:$4 sm:$0xff]  }
  0x30   :  { %v1505_v27 = vld [vmem:[#allocation2 + $0x34] ss:$8 sps:$4 sm:$0xff]   ;;  %v1507_v29 = vld [vmem:[#allocation2 + $0x30] ss:$8 sps:$4 sm:$0xff]   ;;  %v1511_v30 = vld [vmem:[#allocation2 + $0x44] ss:$8 sps:$4 sm:$0xff]  }
  0x31   :  { %716 = vmatpush1.bf16.msra.mxu0 %v1450_v5  ;;  %743 = vmatprep.mubr.bf16.mxu0 %v77_v21  ;;  %v1469_v28 = vld [vmem:[#allocation2 + $0x194] ss:$8 sps:$4 sm:$0xff]   ;;  %v1471_v31 = vld [vmem:[#allocation2 + $0x190] ss:$8 sps:$4 sm:$0xff]   ;;  %v1472_v32 = vld [vmem:[#allocation2 + $0x1a4] ss:$8 sps:$4 sm:$0xff]  }
  0x32   :  { %717 = vmatprep.subr.bf16.mxu0 %v1451_v6  ;;  %671 = vmatpush1.bf16.msra.mxu1 %v1495_v18  ;;  %v1513_v33 = vld [vmem:[#allocation2 + $0x40] ss:$8 sps:$4 sm:$0xff]   ;;  %v1517_v34 = vld [vmem:[#allocation2 + $0x54] ss:$8 sps:$4 sm:$0xff]   ;;  %v1519_v37 = vld [vmem:[#allocation2 + $0x50] ss:$8 sps:$4 sm:$0xff]  }
  0x33   :  { %672 = vmatprep.subr.bf16.mxu1 %v1499_v23  ;;  %v1474_v35 = vld [vmem:[#allocation2 + $0x1a0] ss:$8 sps:$4 sm:$0xff]   ;;  %v1475_v36 = vld [vmem:[#allocation2 + $0x1b4] ss:$8 sps:$4 sm:$0xff]   ;;  %v1523_v38 = vld [vmem:[#allocation2 + $0x64] ss:$8 sps:$4 sm:$0xff]  }
  0x34   :  { %v1477_v39 = vld [vmem:[#allocation2 + $0x1b0] ss:$8 sps:$4 sm:$0xff]   ;;  %v1478_v40 = vld [vmem:[#allocation2 + $0x1c4] ss:$8 sps:$4 sm:$0xff]   ;;  %v1525_v41 = vld [vmem:[#allocation2 + $0x60] ss:$8 sps:$4 sm:$0xff]  }
  0x35   :  { %718 = vmatpush1.bf16.msra.mxu0 %v1453_v7  ;;  %v1529_v42 = vld [vmem:[#allocation2 + $0x74] ss:$8 sps:$4 sm:$0xff]   ;;  %v1480_v43 = vld [vmem:[#allocation2 + $0x1c0] ss:$8 sps:$4 sm:$0xff]   ;;  %v1531_v45 = vld [vmem:[#allocation2 + $0x70] ss:$8 sps:$4 sm:$0xff]  }
  0x36   :  { %719 = vmatprep.subr.bf16.mxu0 %v1454_v8  ;;  %673 = vmatpush1.bf16.msra.mxu1 %v1501_v24  ;;  %v1481_v44 = vld [vmem:[#allocation2 + $0x1d4] ss:$8 sps:$4 sm:$0xff]   ;;  %v1535_v46 = vld [vmem:[#allocation2 + $0x84] ss:$8 sps:$4 sm:$0xff]   ;;  %v1483_v47 = vld [vmem:[#allocation2 + $0x1d0] ss:$8 sps:$4 sm:$0xff]  }
  0x37   :  { %674 = vmatprep.subr.bf16.mxu1 %v1505_v27  ;;  %v1484_v48 = vld [vmem:[#allocation2 + $0x1e4] ss:$8 sps:$4 sm:$0xff]   ;;  %v1537_v49 = vld [vmem:[#allocation2 + $0x80] ss:$8 sps:$4 sm:$0xff]   ;;  %v1541_v50 = vld [vmem:[#allocation2 + $0x94] ss:$8 sps:$4 sm:$0xff]  }
  0x38   :  { %v1486_v51 = vld [vmem:[#allocation2 + $0x1e0] ss:$8 sps:$4 sm:$0xff]   ;;  %v1490_v52 = vld [vmem:[#allocation2 + $0x1f4] ss:$8 sps:$4 sm:$0xff]   ;;  %v1543_v53 = vld [vmem:[#allocation2 + $0x90] ss:$8 sps:$4 sm:$0xff]  }
  0x39   :  { %720 = vmatpush1.bf16.msra.mxu0 %v1456_v9  ;;  %v1547_v54 = vld [vmem:[#allocation2 + $0xa4] ss:$8 sps:$4 sm:$0xff]   ;;  %v1492_v55 = vld [vmem:[#allocation2 + $0x1f0] ss:$8 sps:$4 sm:$0xff]   ;;  %v1549_v59 = vld [vmem:[#allocation2 + $0xa0] ss:$8 sps:$4 sm:$0xff]  }
  0x3a   :  { %721 = vmatprep.subr.bf16.mxu0 %v1457_v10  ;;  %675 = vmatpush1.bf16.msra.mxu1 %v1507_v29  ;;  %v1498_v56 = vld [vmem:[#allocation2 + $0x204] ss:$8 sps:$4 sm:$0xff]   ;;  %v64_v57 = vld [vmem:[%s1895_s0 + $0x10] sm:$0xff]  ;;  %v1496_v61 = vld [vmem:[#allocation2 + $0x200] ss:$8 sps:$4 sm:$0xff]  }
  0x3b   :  { %676 = vmatprep.subr.bf16.mxu1 %v1511_v30  ;;  %v70_v58 = vld [vmem:[%s1895_s0 + $0x40] sm:$0xff]  ;;  %v1553_v60 = vld [vmem:[#allocation2 + $0xb4] ss:$8 sps:$4 sm:$0xff]   ;;  %v1555_v0 = vld [vmem:[#allocation2 + $0xb0] ss:$8 sps:$4 sm:$0xff]  }
  0x3c   :  { %v76_v62 = vpack.c.bf16 %v70_v58, %v64_v57  ;;  %v1504_v63 = vld [vmem:[#allocation2 + $0x214] ss:$8 sps:$4 sm:$0xff]   ;;  %v1559_v1 = vld [vmem:[#allocation2 + $0xc4] ss:$8 sps:$4 sm:$0xff]   ;;  %v1502_v5 = vld [vmem:[#allocation2 + $0x210] ss:$8 sps:$4 sm:$0xff]  }
  0x3d   :  { %722 = vmatpush1.bf16.msra.mxu0 %v1459_v11  ;;  %v63_v2 = vld [vmem:[%s1895_s0 + $0x8] sm:$0xff]  ;;  %v69_v3 = vld [vmem:[%s1895_s0 + $0x38] sm:$0xff]  ;;  %v68_v23 = vld [vmem:[%s1895_s0 + $0x30] sm:$0xff] }
  0x3e   :  { %723 = vmatprep.subr.bf16.mxu0 %v1460_v12  ;;  %677 = vmatpush1.bf16.msra.mxu1 %v1513_v33  ;;  %v75_v4 = vpack.c.bf16 %v69_v3, %v63_v2  ;;  %v67_v6 = vld [vmem:[%s1895_s0 + $0x28] sm:$0xff]  ;;  %v73_v9 = vld [vmem:[%s1895_s0 + $0x58] sm:$0xff]  ;;  %v1587_v27 = vld [vmem:[#allocation5] sm:$0xff]   ;;  %v1700_v2 = vmov 0.0  }
  0x3f   :  { %678 = vmatprep.subr.bf16.mxu1 %v1517_v34  ;;  %v1510_v7 = vld [vmem:[#allocation2 + $0x224] ss:$8 sps:$4 sm:$0xff]   ;;  %v1561_v8 = vld [vmem:[#allocation2 + $0xc0] ss:$8 sps:$4 sm:$0xff]   ;;  %v1565_v10 = vld [vmem:[#allocation2 + $0xd4] ss:$8 sps:$4 sm:$0xff]   ;;  %v79_v11 = vpack.c.bf16 %v73_v9, %v67_v6 }
  0x40   :  { %v1508_v12 = vld [vmem:[#allocation2 + $0x220] ss:$8 sps:$4 sm:$0xff]   ;;  %700 = vmatprep.mubr.bf16.mxu1 %v75_v4  ;;  %v1516_v13 = vld [vmem:[#allocation2 + $0x234] ss:$8 sps:$4 sm:$0xff]   ;;  %v1567_v14 = vld [vmem:[#allocation2 + $0xd0] ss:$8 sps:$4 sm:$0xff]  }
  0x41   :  { %724 = vmatpush1.bf16.msra.mxu0 %v1462_v15  ;;  %v1571_v15 = vld [vmem:[#allocation2 + $0xe4] ss:$8 sps:$4 sm:$0xff]   ;;  %v1573_v18 = vld [vmem:[#allocation2 + $0xe0] ss:$8 sps:$4 sm:$0xff]   ;;  %v1577_v19 = vld [vmem:[#allocation2 + $0xf4] ss:$8 sps:$4 sm:$0xff]  }
  0x42   :  { %725 = vmatprep.subr.bf16.mxu0 %v1463_v16  ;;  %679 = vmatpush1.bf16.msra.mxu1 %v1519_v37  ;;  %v1514_v16 = vld [vmem:[#allocation2 + $0x230] ss:$8 sps:$4 sm:$0xff]   ;;  %v1522_v17 = vld [vmem:[#allocation2 + $0x244] ss:$8 sps:$4 sm:$0xff]   ;;  %v1520_v20 = vld [vmem:[#allocation2 + $0x240] ss:$8 sps:$4 sm:$0xff]  }
  0x43   :  { %680 = vmatprep.subr.bf16.mxu1 %v1523_v38  ;;  %v1579_v21 = vld [vmem:[#allocation2 + $0xf0] ss:$8 sps:$4 sm:$0xff]   ;;  %v1528_v24 = vld [vmem:[#allocation2 + $0x254] ss:$8 sps:$4 sm:$0xff]   ;;  %v1588_v30 = vld [vmem:[#allocation5 + $0x48] sm:$0xff]  }
  0x44   :  { %v1540_v33 = vld [vmem:[#allocation2 + $0x274] ss:$8 sps:$4 sm:$0xff]   ;;  %v1546_v37 = vld [vmem:[#allocation2 + $0x284] ss:$8 sps:$4 sm:$0xff]  }
  0x45   :  { %726 = vmatpush1.bf16.msra.mxu0 %v1465_v22  ;;  %v62_v22 = vld [vmem:[%s1895_s0] sm:$0xff]  ;;  %v1590_v34 = vld [vmem:[#allocation5 + $0x50] sm:$0xff]   ;;  %v1592_v38 = vld [vmem:[#allocation5 + $0x58] sm:$0xff]  }
  0x46   :  { %727 = vmatprep.subr.bf16.mxu0 %v1466_v25  ;;  %681 = vmatpush1.bf16.msra.mxu1 %v1525_v41  ;;  %v1586_v25 = vld [vmem:[#allocation5 + $0x40] sm:$0xff]   ;;  %v74_v29 = vpack.c.bf16 %v68_v23, %v62_v22  ;;  %v1552_v41 = vld [vmem:[#allocation2 + $0x294] ss:$8 sps:$4 sm:$0xff]  }
  0x47   :  { %682 = vmatprep.subr.bf16.mxu1 %v1529_v42  ;;  %v1550_v42 = vld [vmem:[#allocation2 + $0x290] ss:$8 sps:$4 sm:$0xff]   ;;  %v1594_v58 = vld [vmem:[#allocation5 + $0x60] sm:$0xff]  }
  0x49   :  { %728 = vmatpush1.bf16.msra.mxu0 %v1468_v26  ;;  %v1526_v26 = vld [vmem:[#allocation2 + $0x250] ss:$8 sps:$4 sm:$0xff]  }
  0x4a   :  { %729 = vmatprep.subr.bf16.mxu0 %v1469_v28  ;;  %683 = vmatpush1.bf16.msra.mxu1 %v1531_v45  ;;  %v1534_v28 = vld [vmem:[#allocation2 + $0x264] ss:$8 sps:$4 sm:$0xff]   ;;  %v1564_v45 = vld [vmem:[#allocation2 + $0x2b4] ss:$8 sps:$4 sm:$0xff]  }
  0x4b   :  { %684 = vmatprep.subr.bf16.mxu1 %v1535_v46  ;;  %v1562_v46 = vld [vmem:[#allocation2 + $0x2b0] ss:$8 sps:$4 sm:$0xff]  }
  0x4d   :  { %730 = vmatpush1.bf16.msra.mxu0 %v1471_v31  ;;  %v1532_v31 = vld [vmem:[#allocation2 + $0x260] ss:$8 sps:$4 sm:$0xff]  }
  0x4e   :  { %731 = vmatprep.subr.bf16.mxu0 %v1472_v32  ;;  %685 = vmatpush1.bf16.msra.mxu1 %v1537_v49  ;;  %v1589_v32 = vld [vmem:[#allocation5 + $0x8] sm:$0xff]   ;;  %v1576_v49 = vld [vmem:[#allocation2 + $0x2d4] ss:$8 sps:$4 sm:$0xff]  }
  0x4f   :  { %686 = vmatprep.subr.bf16.mxu1 %v1541_v50  ;;  %v1574_v50 = vld [vmem:[#allocation2 + $0x2d0] ss:$8 sps:$4 sm:$0xff]  }
  0x51   :  { %732 = vmatpush1.bf16.msra.mxu0 %v1474_v35  ;;  %v1538_v35 = vld [vmem:[#allocation2 + $0x270] ss:$8 sps:$4 sm:$0xff]  }
  0x52   :  { %733 = vmatprep.subr.bf16.mxu0 %v1475_v36  ;;  %687 = vmatpush1.bf16.msra.mxu1 %v1543_v53  ;;  %v1591_v36 = vld [vmem:[#allocation5 + $0x10] sm:$0xff]  }
  0x53   :  { %688 = vmatprep.subr.bf16.mxu1 %v1547_v54  ;;  %v1585_v53 = vld [vmem:[#allocation2 + $0x2f4] ss:$8 sps:$4 sm:$0xff]   ;;  %v1583_v54 = vld [vmem:[#allocation2 + $0x2f0] ss:$8 sps:$4 sm:$0xff]  }
  0x55   :  { %734 = vmatpush1.bf16.msra.mxu0 %v1477_v39  ;;  %v1544_v39 = vld [vmem:[#allocation2 + $0x280] ss:$8 sps:$4 sm:$0xff]  }
  0x56   :  { %735 = vmatprep.subr.bf16.mxu0 %v1478_v40  ;;  %689 = vmatpush1.bf16.msra.mxu1 %v1549_v59  ;;  %v1593_v40 = vld [vmem:[#allocation5 + $0x18] sm:$0xff]   ;;  %v1595_v59 = vld [vmem:[#allocation5 + $0x20] sm:$0xff]  }
  0x57   :  { %690 = vmatprep.subr.bf16.mxu1 %v1553_v60  ;;  %v1596_v60 = vld [vmem:[#allocation5 + $0x68] sm:$0xff]  }
  0x59   :  { %736 = vmatpush1.bf16.msra.mxu0 %v1480_v43  ;;  %v1558_v43 = vld [vmem:[#allocation2 + $0x2a4] ss:$8 sps:$4 sm:$0xff]  }
  0x5a   :  { %737 = vmatprep.subr.bf16.mxu0 %v1481_v44  ;;  %691 = vmatpush1.bf16.msra.mxu1 %v1555_v0  ;;  %v1556_v44 = vld [vmem:[#allocation2 + $0x2a0] ss:$8 sps:$4 sm:$0xff]   ;;  %v1600_v0 = vld [vmem:[#allocation5 + $0x78] sm:$0xff]  }
  0x5b   :  { %692 = vmatprep.subr.bf16.mxu1 %v1559_v1  ;;  %v1601_v1 = vld [vmem:[#allocation5 + $0x38] sm:$0xff]  }
  0x5d   :  { %738 = vmatpush1.bf16.msra.mxu0 %v1483_v47  ;;  %v1570_v47 = vld [vmem:[#allocation2 + $0x2c4] ss:$8 sps:$4 sm:$0xff]  }
  0x5e   :  { %739 = vmatprep.subr.bf16.mxu0 %v1484_v48  ;;  %693 = vmatpush1.bf16.msra.mxu1 %v1561_v8  ;;  %v1568_v48 = vld [vmem:[#allocation2 + $0x2c0] ss:$8 sps:$4 sm:$0xff]  }
  0x5f   :  { %694 = vmatprep.subr.bf16.mxu1 %v1565_v10  ;;  %v176_v10 = vld [vmem:[%s1897_s2] sm:$0x3] }
  0x61   :  { %740 = vmatpush1.bf16.msra.mxu0 %v1486_v51  ;;  %v1582_v51 = vld [vmem:[#allocation2 + $0x2e4] ss:$8 sps:$4 sm:$0xff]  }
  0x62   :  { %741 = vmatprep.subr.bf16.mxu0 %v1490_v52  ;;  %695 = vmatpush1.bf16.msra.mxu1 %v1567_v14  ;;  %v1580_v52 = vld [vmem:[#allocation2 + $0x2e0] ss:$8 sps:$4 sm:$0xff]  }
  0x63   :  { %696 = vmatprep.subr.bf16.mxu1 %v1571_v15 }
  0x65   :  { %742 = vmatpush1.bf16.msra.mxu0 %v1492_v55  ;;  %v66_v55 = vld [vmem:[%s1895_s0 + $0x20] sm:$0xff] }
  0x66   :  { %754 = vmatprep.subr.bf16.mxu0 %v1498_v56  ;;  %697 = vmatpush1.bf16.msra.mxu1 %v1573_v18  ;;  %v72_v56 = vld [vmem:[%s1895_s0 + $0x50] sm:$0xff] }
  0x67   :  { %698 = vmatprep.subr.bf16.mxu1 %v1577_v19  ;;  %v78_v57 = vpack.c.bf16 %v72_v56, %v66_v55  ;;  %v1613_v55 = vld [vmem:[%s1902_s7 + $0x18] sm:$0xff]   ;;  %v1338_v56 = vld [vmem:[%s1901_s6] ss:$0 sm:$0xff]  ;;  %s1702_s6 = smov [#allocation7]  }
  0x68   :  { %744 = vmatmul.mubr.bf16.vlgmr.msra.gmra.mrb[0].mxu0 %v76_v62  ;;  %v1598_v62 = vld [vmem:[#allocation5 + $0x70] sm:$0xff]  }
  0x69   :  { %755 = vmatpush1.bf16.msra.mxu0 %v1496_v61  ;;  %786 = vmatprep.mubr.bf16.mxu0 %v79_v11  ;;  %v1597_v61 = vld [vmem:[#allocation5 + $0x28] sm:$0xff]  }
  0x6a   :  { %756 = vmatprep.subr.bf16.mxu0 %v1504_v63  ;;  %699 = vmatpush1.bf16.msra.mxu1 %v1579_v21  ;;  %v1599_v63 = vld [vmem:[#allocation5 + $0x30] sm:$0xff]  }
  0x6b   :  { %1353 = vmatprep.subr.bf16.mxu1 %v1586_v25 }
  0x6d   :  { %757 = vmatpush1.bf16.msra.mxu0 %v1502_v5  ;;  %701 = vmatmul.mubr.bf16.vlgmr.msra.gmra.mrb[0].mxu1 %v74_v29 }
  0x6e   :  { %758 = vmatprep.subr.bf16.mxu0 %v1510_v7  ;;  %1354 = vmatpush3.bf16.msra.mxu1 %v1587_v27  ;;  %v178_v7 = vlaneseq }
  0x6f   :  { %1355 = vmatprep.subr.bf16.mxu1 %v1588_v30 }
  0x70   :  { %v179_v8 = vshrl.u32 %v178_v7, 7 }
  0x71   :  { %759 = vmatpush1.bf16.msra.mxu0 %v1508_v12 }
  0x72   :  { %760 = vmatprep.subr.bf16.mxu0 %v1516_v13  ;;  %1356 = vmatpush3.bf16.msra.mxu1 %v1589_v32  ;;  %v180_v9 = vsub.s32 0, %v179_v8  ;;  %v184_v11 = vsub.s32 1, %v179_v8  ;;  %v1602_v32 = vld [vmem:[%s1900_s5] sm:$0xff]  }
  0x73   :  { %1357 = vmatprep.subr.bf16.mxu1 %v1590_v34  ;;  %v1604_v34 = vld [vmem:[%s1900_s5 + $0x10] sm:$0xff]  }
  0x74   :  { %v181_v12 = vrot.slane %v176_v10, %v180_v9  ;;  %v185_v13 = vrot.slane %v176_v10, %v184_v11 }
  0x75   :  { %761 = vmatpush1.bf16.msra.mxu0 %v1514_v16 }
  0x76   :  { %762 = vmatprep.subr.bf16.mxu0 %v1522_v17  ;;  %1358 = vmatpush3.bf16.msra.mxu1 %v1591_v36  ;;  %v1606_v36 = vld [vmem:[%s1900_s5 + $0x20] sm:$0xff]  }
  0x77   :  { %1359 = vmatprep.subr.bf16.mxu1 %v1592_v38  ;;  %v1608_v38 = vld [vmem:[%s1900_s5 + $0x30] sm:$0xff]  }
  0x79   :  { %763 = vmatpush1.bf16.msra.mxu0 %v1520_v20 }
  0x7a   :  { %764 = vmatprep.subr.bf16.mxu0 %v1528_v24  ;;  %1360 = vmatpush3.bf16.msra.mxu1 %v1593_v40 }
  0x7b   :  { %1361 = vmatprep.subr.bf16.mxu1 %v1594_v58 }
  0x7d   :  { %765 = vmatpush1.bf16.msra.mxu0 %v1526_v26 }
  0x7e   :  { %766 = vmatprep.subr.bf16.mxu0 %v1534_v28  ;;  %1362 = vmatpush3.bf16.msra.mxu1 %v1595_v59 }
  0x7f   :  { %1363 = vmatprep.subr.bf16.mxu1 %v1596_v60 }
  0x81   :  { %767 = vmatpush1.bf16.msra.mxu0 %v1532_v31 }
  0x82   :  { %768 = vmatprep.subr.bf16.mxu0 %v1540_v33  ;;  %1364 = vmatpush3.bf16.msra.mxu1 %v1597_v61  ;;  %v1603_v33 = vld [vmem:[%s1900_s5 + $0x8] sm:$0xff]  }
  0x83   :  { %1365 = vmatprep.subr.bf16.mxu1 %v1598_v62 }
  0x85   :  { %769 = vmatpush1.bf16.msra.mxu0 %v1538_v35  ;;  %v1605_v35 = vld [vmem:[%s1900_s5 + $0x18] sm:$0xff]  }
  0x86   :  { %770 = vmatprep.subr.bf16.mxu0 %v1546_v37  ;;  %1366 = vmatpush3.bf16.msra.mxu1 %v1599_v63  ;;  %v1607_v37 = vld [vmem:[%s1900_s5 + $0x28] sm:$0xff]  }
  0x87   :  { %1367 = vmatprep.subr.bf16.mxu1 %v1600_v0 }
  0x89   :  { %771 = vmatpush1.bf16.msra.mxu0 %v1544_v39  ;;  %v1609_v39 = vld [vmem:[%s1900_s5 + $0x38] sm:$0xff]  }
  0x8a   :  { %772 = vmatprep.subr.bf16.mxu0 %v1552_v41  ;;  %1368 = vmatpush3.bf16.msra.mxu1 %v1601_v1  ;;  %v1321_v41 = vld [vmem:[%s1899_s4] ss:$0 sm:$0xff] }
  0x8b   :  { %1389 = vmatprep.subr.bf16.mxu1 %v1700_v2 }
  0x8d   :  { %773 = vmatpush1.bf16.msra.mxu0 %v1550_v42 }
  0x8e   :  { %774 = vmatprep.subr.bf16.mxu0 %v1558_v43 }
  0x91   :  { %775 = vmatpush1.bf16.msra.mxu0 %v1556_v44 }
  0x92   :  { %776 = vmatprep.subr.bf16.mxu0 %v1564_v45 }
  0x95   :  { %777 = vmatpush1.bf16.msra.mxu0 %v1562_v46 }
  0x96   :  { %778 = vmatprep.subr.bf16.mxu0 %v1570_v47 }
  0x99   :  { %779 = vmatpush1.bf16.msra.mxu0 %v1568_v48 }
  0x9a   :  { %780 = vmatprep.subr.bf16.mxu0 %v1576_v49 }
  0x9d   :  { %781 = vmatpush1.bf16.msra.mxu0 %v1574_v50 }
  0x9e   :  { %782 = vmatprep.subr.bf16.mxu0 %v1582_v51  ;;  %v1610_v51 = vld [vmem:[%s1902_s7] sm:$0xff]  }
  0xa1   :  { %783 = vmatpush1.bf16.msra.mxu0 %v1580_v52 }
  0xa2   :  { %784 = vmatprep.subr.bf16.mxu0 %v1585_v53  ;;  %v1611_v53 = vld [vmem:[%s1902_s7 + $0x8] sm:$0xff]  }
  0xa5   :  { %785 = vmatpush1.bf16.msra.mxu0 %v1583_v54  ;;  %v1612_v54 = vld [vmem:[%s1902_s7 + $0x10] sm:$0xff]   ;;  %s1212_s7 = sshll.u32 %s1702_s6, 4  ;;  %s1213_s7 = int_to_ptr.vmem [resolvable:$true] %s1212_s7 }
  0xa6   :  { %p1671_p3 = scmp.lt.s32.totalorder %s1213_s7, %s1213_s7 }
  0xa8   :  { %787 = vmatmul.mubr.bf16.vlgmr.msra.gmra.mrb[0].mxu0 %v78_v57 }
 0x140   :  { %v702_v3 = vpop.f32.mrb[0].mxu1 }
 0x141   :  { %v704_v4 = vpop.f32.mrb[1].mxu1  ;;  %v703_v14 = vadd.f32 %v702_v3, %v181_v12 }
 0x142   :  { %v706_v5 = vpop.f32.mrb[2].mxu1  ;;  %v705_v15 = vadd.f32 %v704_v4, %v185_v13 }
 0x143   :  { %v708_v6 = vpop.f32.mrb[3].mxu1  ;;  %v707_v17 = vadd.f32 %v706_v5, %v181_v12 }
 0x144   :  { %v709_v20 = vadd.f32 %v708_v6, %v185_v13 }
 0x17b   :  { %v788_v16 = vpop.f32.mrb[0].mxu0 }
 0x17c   :  { %v1422_v18 = vadd.f32 %v788_v16, %v703_v14  ;;  %v790_v19 = vpop.f32.mrb[1].mxu0 }
 0x17d   :  { %v1424_v21 = vadd.f32 %v790_v19, %v705_v15  ;;  %v792_v22 = vpop.f32.mrb[2].mxu0 }
 0x17e   :  { %v1426_v23 = vadd.f32 %v792_v22, %v707_v17  ;;  %v794_v24 = vpop.f32.mrb[3].mxu0  ;;  %v797_v26 = vmax.f32 %v1422_v18, 0.0 }
 0x17f   :  { %v1428_v25 = vadd.f32 %v794_v24, %v709_v20  ;;  %v798_v28 = vmax.f32 %v1424_v21, 0.0 }
 0x180   :  { %v799_v27 = vmax.f32 %v1426_v23, 0.0 }
 0x181   :  { %v800_v29 = vmax.f32 %v1428_v25, 0.0 }
 0x182   :  { %v801_v30 = vpack.c.bf16 %v799_v27, %v797_v26 }
 0x183   :  { %v802_v31 = vpack.c.bf16 %v800_v29, %v798_v28 }
 0x185   :  { %970 = vmatprep.mubr.bf16.mxu1 %v802_v31 }
 0x186   :  { %971 = vmatmul.mubr.bf16.vlgmr.msra.gmra.mrb[4].mxu1 %v801_v30 }
 0x187   :  { %1390 = vmatpush3.bf16.msra.mxu1 %v1602_v32  ;;  %1405 = vmatprep.mubr.msk.bf16.mxu1 %vm1701_vm0, %v1700_v2 }
 0x188   :  { %1391 = vmatprep.subr.bf16.mxu1 %v1700_v2 }
 0x18b   :  { %1392 = vmatpush3.bf16.msra.mxu1 %v1603_v33 }
 0x18c   :  { %1393 = vmatprep.subr.bf16.mxu1 %v1700_v2 }
 0x18f   :  { %1394 = vmatpush3.bf16.msra.mxu1 %v1604_v34 }
 0x190   :  { %1395 = vmatprep.subr.bf16.mxu1 %v1700_v2 }
 0x193   :  { %1396 = vmatpush3.bf16.msra.mxu1 %v1605_v35 }
 0x194   :  { %1397 = vmatprep.subr.bf16.mxu1 %v1700_v2 }
 0x197   :  { %1398 = vmatpush3.bf16.msra.mxu1 %v1606_v36 }
 0x198   :  { %1399 = vmatprep.subr.bf16.mxu1 %v1700_v2 }
 0x19b   :  { %1400 = vmatpush3.bf16.msra.mxu1 %v1607_v37 }
 0x19c   :  { %1401 = vmatprep.subr.bf16.mxu1 %v1700_v2 }
 0x19f   :  { %1402 = vmatpush3.bf16.msra.mxu1 %v1608_v38 }
 0x1a0   :  { %1403 = vmatprep.subr.bf16.mxu1 %v1700_v2 }
 0x1a3   :  { %1404 = vmatpush3.bf16.msra.mxu1 %v1609_v39 }
 0x1a4   :  { %1409 = vmatprep.subr.bf16.mxu1 %v1700_v2 }
 0x259   :  { %v1369_v40 = vpop.f32.mrb[4].mxu1 }
 0x25a   :  { %v1370_v42 = vpop.f32.mrb[5].mxu1 }
 0x25b   :  { %v1371_v43 = vadd.f32 %v1370_v42, %v1369_v40  ;;  %v1372_v44 = vpop.f32.mrb[6].mxu1 }
 0x25c   :  { %v1373_v45 = vpop.f32.mrb[7].mxu1 }
 0x25d   :  { %v973_v46 = vadd.f32 %v1371_v43, %v1321_v41  ;;  %v1374_v47 = vadd.f32 %v1373_v45, %v1372_v44 }
 0x25f   :  { %v976_v48 = vadd.f32 %v1374_v47, %v1321_v41  ;;  %v979_v49 = vmax.f32 %v973_v46, 0.0 }
 0x261   :  { %v980_v50 = vmax.f32 %v976_v48, 0.0 }
 0x263   :  { %v981_v52 = vpack.c.bf16 %v980_v50, %v979_v49 }
 0x265   :  { %1406 = vmatmul.mubr.bf16.vlgmr.msra.gmra.mrb[8].mxu1 %v981_v52 }
 0x266   :  { %1410 = vmatpush3.bf16.msra.mxu1 %v1610_v51  ;;  %1417 = vmatprep.mubr.msk.bf16.mxu1 %vm1701_vm0, %v1700_v2 }
 0x267   :  { %1411 = vmatprep.subr.bf16.mxu1 %v1700_v2 }
 0x26a   :  { %1412 = vmatpush3.bf16.msra.mxu1 %v1611_v53 }
 0x26b   :  { %1413 = vmatprep.subr.bf16.mxu1 %v1700_v2 }
 0x26e   :  { %1414 = vmatpush3.bf16.msra.mxu1 %v1612_v54 }
 0x26f   :  { %1415 = vmatprep.subr.bf16.mxu1 %v1700_v2  ;;  %v1347_v2 = vld [vmem:[%s1903_s8] ss:$0 sm:$0xff]  ;;  %s1666_s8 = scalar_lea.vmem %s1213_s7, 256 }
 0x270   :  { %p1667_p2 = scmp.ne.s32.totalorder %s1213_s7, %s1666_s8  ;;  %p1672_p4 = scmp.lt.s32.totalorder %s1666_s8, %s1666_s8 }
 0x272   :  { %1416 = vmatpush3.bf16.msra.mxu1 %v1613_v55  ;;  %p1673_p5 = por %p1672_p4, %p1671_p3 }
 0x274   :  { %p1674_p6 = pnand %p1673_p5, %p1667_p2 }
 0x338   :  { %v1087_v57 = vpop.f32.mrb[8].mxu1 }
 0x339   :  { %v1088_v58 = vadd.f32 %v1338_v56, %v1087_v57  ;;  %v1407_v59 = vpop.f32.mrb[9].mxu1 }
 0x33a   :  { %v1090_v60 = vpop.f32.mrb[10].mxu1 }
 0x33b   :  { %v1091_v61 = vadd.f32 %v1338_v56, %v1090_v60  ;;  %v1408_v62 = vpop.f32.mrb[11].mxu1  ;;  %v1094_v63 = vmax.f32 %v1088_v58, 0.0 }
 0x33d   :  { %v1095_v0 = vmax.f32 %v1091_v61, 0.0 }
 0x33f   :  { %v1096_v1 = vpack.c.bf16 %v1095_v0, %v1094_v63 }
 0x341   :  { %1418 = vmatmul.mubr.msk.bf16.vlgmr.msra.gmra.mrb[12].mxu1 %vm1136_vm1, %v1096_v1 }
 0x414   :  { %v1174_v3 = vpop.f32.mrb[12].mxu1 }
 0x415   :  { %v1175_v4 = vadd.f32 %v1347_v2, %v1174_v3  ;;  %v1419_v5 = vpop.f32.mrb[13].mxu1 }
 0x416   :  { %v1177_v6 = vpop.f32.mrb[14].mxu1 }
 0x417   :  { %1181 = vmax.xlane.f32.xlu0 %v1175_v4  ;;  %v1420_v7 = vpop.f32.mrb[15].mxu1  ;;  %v1178_v8 = vadd.f32 %v1347_v2, %v1177_v6 }
 0x41b   :  { %1183 = vmax.xlane.f32.xlu0 %v1178_v8 }
 0x4a4   :  { %v1182_v9 = vpop.xlane.xlu0 %1181 }
 0x4a5   :  { %v1185_v10 = vsub.f32 %v1175_v4, %v1182_v9 }
 0x4a7   :  { %v1187_v11 = vmul.f32 1.442695, %v1185_v10 }
 0x4a8   :  { %v1184_v12 = vpop.xlane.xlu0 %1183 }
 0x4a9   :  { %1614 = vpow2.f32 %v1187_v11  ;;  %v1186_v13 = vsub.f32 %v1178_v8, %v1184_v12 }
 0x4ab   :  { %v1189_v14 = vmul.f32 1.442695, %v1186_v13 }
 0x4ad   :  { %1616 = vpow2.f32 %v1189_v14 }
 0x4b3   :  { %v1615_v15 = vpop.eup %1614 }
 0x4b4   :  { %1191 = vadd.xlane.f32.xlu1 %v1615_v15 }
 0x4b7   :  { %v1617_v16 = vpop.eup %1616 }
 0x4b8   :  { %1193 = vadd.xlane.f32.xlu1 %v1617_v16 }
 0x541   :  { %v1192_v17 = vpop.xlane.xlu1 %1191 }
 0x542   :  { %1618 = vrcp.f32 %v1192_v17 }
 0x545   :  { %v1194_v18 = vpop.xlane.xlu1 %1193 }
 0x546   :  { %1620 = vrcp.f32 %v1194_v18 }
 0x54c   :  { %v1619_v19 = vpop.eup %1618 }
 0x54d   :  { %v1197_v20 = vmul.f32 %v1619_v19, %v1192_v17 }
 0x54f   :  { %v1199_v21 = vsub.f32 2.0, %v1197_v20 }
 0x550   :  { %v1621_v22 = vpop.eup %1620 }
 0x551   :  { %v1201_v23 = vmul.f32 %v1619_v19, %v1199_v21  ;;  %v1198_v24 = vmul.f32 %v1621_v22, %v1194_v18 }
 0x553   :  { %v1200_v25 = vsub.f32 2.0, %v1198_v24  ;;  %v1203_v26 = vmul.f32 %v1615_v15, %v1201_v23 }
 0x555   :  { %v1202_v27 = vmul.f32 %v1621_v22, %v1200_v25  ;;  %1205 = vst [vmem:[#allocation7] sm:$0xff] %v1203_v26 }
 0x557   :  { %v1204_v28 = vmul.f32 %v1617_v16, %v1202_v27 }
 0x559   :  { %1206 = vst [vmem:[#allocation7 + $0x8] sm:$0xff] %v1204_v28 }
 0x55a   :  { %1677 = shalt.err (!%p1674_p6)
}
 0x55b   :  { %s1678_s26 = scalar_lea.hbm %s1904_s9, 256 }
 0x55c   :  { %p1679_p7 = scmp.ne.s32.totalorder %s1904_s9, %s1678_s26  ;;  %p1682_p8 = scmp.lt.u32.totalorder %s1678_s26, %s1904_s9 }
 0x55e   :  { %p1684_p9 = pnand %p1682_p8, %p1679_p7 }
 0x560   :  { %1687 = shalt.err (!%p1684_p9)
}
 0x561   :  { %1218 = dma.vmem_to_hbm [thread:$0]  %s1213_s7, 256, %s1904_s9, [#allocation4], %s1695_s19, %s1695_s19, %s1696_s20  }
 0x562   :  { %1692 = dma.done.wait [#allocation4], 256  }
 0x563   :  { %1693 = vsyncadd [#allocation4], 4294967040 }
 0x564   :  { %1222 = vsyncpa [#allocation3], 1 }
 0x565   :  { %1223 = vsyncpa [#allocation6], 1 }
 0x566   :  { %1224 = vsyncpa [#allocation4], 1 }

</bundles_post_ra>
